<compile_context>
chip_gen: v7x
topology: tpu7x:2x2x1
jax: 0.10.0
libtpu: 0.0.40
codegen_flags: <defaults>
</compile_context>

<pallas_src>
import functools

import jax
import jax.numpy as jnp
from jax import lax
from jax.experimental import pallas as pl
from jax.experimental.pallas import tpu as pltpu


def _ls_ce_kernel(logits_ref, targets_ref, out_ref, *,
                  confidence, smooth_coef, tile_rows, tiles_per_shard,
                  batch, need_row_mask):
    i = pl.program_id(1)

    @pl.when(i == 0)
    def _init():
        out_ref[...] = jnp.zeros_like(out_ref)

    x = logits_ref[...].astype(jnp.float32)            # (tb, C), f32 accumulation
    tgt = targets_ref[...]                             # (tb, 1) int32
    tb, c = x.shape

    # Row-wise logsumexp (max-shift for stability); log_probs never materialized.
    m = jnp.max(x, axis=-1, keepdims=True)                          # (tb, 1)
    sumexp = jnp.sum(jnp.exp(x - m), axis=-1, keepdims=True)        # EUP + XLU
    lse = m + jnp.log(sumexp)                                       # (tb, 1)
    sum_x = jnp.sum(x, axis=-1, keepdims=True)                      # (tb, 1)

    # One-hot gather of x[row, target[row]] (no HBM gather).
    col_ids = lax.broadcasted_iota(jnp.int32, (tb, c), 1)
    x_tgt = jnp.sum(jnp.where(col_ids == tgt, x, 0.0), axis=-1, keepdims=True)

    # (1-s)*nll + s*smooth  ==  lse - (1-s)*x[tgt] - (s/C)*sum(x)
    per_row = lse - confidence * x_tgt - smooth_coef * sum_x        # (tb, 1)

    if need_row_mask:                      # only for ragged / phantom tiles
        shard = pl.program_id(0)
        row0 = (shard * tiles_per_shard + i) * tile_rows
        rows = lax.broadcasted_iota(jnp.int32, (tb, 1), 0) + row0
        per_row = jnp.where(rows < batch, per_row, 0.0)

    out_ref[...] = out_ref[...] + jnp.sum(per_row)     # shard-resident accumulator


def label_smoothing_cross_entropy(logits, targets, smoothing=0.1,
                                  max_tile_rows=None):
    """logits: (B, C) float (any dtype), targets: (B,) int -> scalar mean loss."""
    b, c = logits.shape
    itemsize = jnp.dtype(logits.dtype).itemsize
    targets2d = targets.astype(jnp.int32).reshape(b, 1)

    # --- VMEM-budget-driven batch tiling -------------------------------------
    try:  # per-core VMEM capacity (v5e/v6e: 128 MiB, v7x: 64 MiB)
        vmem_cap = int(getattr(pltpu.get_tpu_info(), "vmem_capacity_bytes",
                               64 * 1024 * 1024))
    except Exception:
        vmem_cap = 64 * 1024 * 1024
    per_buffer = max(vmem_cap // 8, 1 << 20)   # double-buffered logits <= cap/4

    b8 = ((b + 7) // 8) * 8
    tb = max(8, (per_buffer // max(c * itemsize, 1)) // 8 * 8)
    if itemsize == 2 and tb >= 16:
        tb = (tb // 16) * 16                   # bf16 sublane packing
    if max_tile_rows is not None:
        tb = max(8, min(tb, ((max_tile_rows + 7) // 8) * 8))
    tb = min(tb, b8)
    # TODO(synk): for very large vocab (tb*c*itemsize above budget even at tb=8)
    # add a class-dim grid axis with an online logsumexp reduction.

    n_tiles = -(-b // tb)                      # cdiv
    num_shards = 2 if n_tiles >= 2 else 1      # v7x dual TC; free on 1-TC chips
    tps = -(-n_tiles // num_shards)            # tiles per shard
    need_row_mask = (b % tb != 0) or (num_shards * tps != n_tiles)

    if num_shards * tps == n_tiles:
        def tile_idx(s, i):
            return s * tps + i
    else:  # phantom trailing tile(s): clamp the DMA, rows masked in-kernel
        def tile_idx(s, i):
            return jnp.minimum(s * tps + i, n_tiles - 1)

    kern = functools.partial(
        _ls_ce_kernel,
        confidence=float(1.0 - smoothing),
        smooth_coef=float(smoothing) / float(c),
        tile_rows=tb,
        tiles_per_shard=tps,
        batch=b,
        need_row_mask=need_row_mask,
    )

    out = pl.pallas_call(
        kern,
        out_shape=jax.ShapeDtypeStruct((num_shards, 8, 128), jnp.float32),
        grid=(num_shards, tps),
        in_specs=[
            pl.BlockSpec((tb, c), lambda s, i: (tile_idx(s, i), 0)),
            pl.BlockSpec((tb, 1), lambda s, i: (tile_idx(s, i), 0)),
        ],
        out_specs=pl.BlockSpec((1, 8, 128), lambda s, i: (s, 0, 0)),
        compiler_params=pltpu.CompilerParams(
            dimension_semantics=("parallel", "arbitrary"),
            vmem_limit_bytes=min(vmem_cap * 3 // 4, 100 * 1024 * 1024),
        ),
    )(logits, targets2d)

    return jnp.sum(out[:, 0, 0]) * (1.0 / float(b))


def _reference_loss(logits, targets, smoothing=0.1):
    log_probs = jax.nn.log_softmax(logits.astype(jnp.float32), axis=-1)
    nll = -jnp.take_along_axis(log_probs, targets[:, None], axis=-1)[:, 0]
    smooth = -jnp.mean(log_probs, axis=-1)
    return jnp.mean((1.0 - smoothing) * nll + smoothing * smooth)


if __name__ == "__main__":
    key = jax.random.PRNGKey(0)
    k1, k2, k3, k4 = jax.random.split(key, 4)

    # Case 1: small aligned case (B=8, C=20), f32, single tile.
    B, C = 8, 20
    logits = jax.random.normal(k1, (B, C), dtype=jnp.float32)
    targets = jax.random.randint(k2, (B,), 0, C, dtype=jnp.int32)
    loss = jax.block_until_ready(
        label_smoothing_cross_entropy(logits, targets, smoothing=0.1))
    ref = _reference_loss(logits, targets, smoothing=0.1)
    assert loss.shape == () and bool(jnp.isfinite(loss))
    assert bool(jnp.allclose(loss, ref, rtol=1e-5, atol=1e-5)), (loss, ref)

    # Case 2: ragged batch (B=20) + non-128 vocab + bf16 input, small tiles to
    # exercise the multi-tile / two-shard / phantom-tile / row-mask paths.
    B2, C2 = 20, 33
    logits2 = jax.random.normal(k3, (B2, C2), dtype=jnp.float32).astype(jnp.bfloat16)
    targets2 = jax.random.randint(k4, (B2,), 0, C2, dtype=jnp.int32)
    loss2 = jax.block_until_ready(
        label_smoothing_cross_entropy(logits2, targets2, smoothing=0.1,
                                      max_tile_rows=8))
    ref2 = _reference_loss(logits2, targets2, smoothing=0.1)
    assert bool(jnp.isfinite(loss2))
    assert bool(jnp.allclose(loss2, ref2, rtol=1e-4, atol=1e-4)), (loss2, ref2)

    print("KERNEL_OK")
</pallas_src>

<mosaic_0001>
module attributes {stable_mosaic.version = 11 : i64} {
  func.func @_ls_ce_kernel(%arg0: i32, %arg1: i32, %arg2: memref<8x20xf32, #tpu.memory_space<vmem>>, %arg3: memref<8x1xi32, #tpu.memory_space<vmem>>, %arg4: memref<1x8x128xf32, #tpu.memory_space<vmem>>) attributes {dimension_semantics = [#tpu.dimension_semantics<parallel>, #tpu.dimension_semantics<arbitrary>], iteration_bounds = array<i64: 1, 1>, scalar_prefetch = 0 : i64, scratch_operands = 0 : i64, tpu.core_type = #tpu.core_type<tc>, window_params = [{transform_indices = @transform_0, window_bounds = array<i64: 8, 20>}, {transform_indices = @transform_1, window_bounds = array<i64: 8, 1>}, {transform_indices = @transform_2, window_bounds = array<i64: 1, 8, 128>}]} {
    %c0_i32 = arith.constant 0 : i32
    %0 = arith.cmpi eq, %arg1, %c0_i32 : i32
    %1 = arith.extui %0 : i1 to i32
    %c0_i32_0 = arith.constant 0 : i32
    %2 = arith.cmpi ne, %1, %c0_i32_0 : i32
    scf.if %2 {
      %cst_17 = arith.constant 0.000000e+00 : f32
      %37 = vector.broadcast %cst_17 : f32 to vector<1x8x128xf32>
      %c0_18 = arith.constant 0 : index
      %c0_19 = arith.constant 0 : index
      %c0_20 = arith.constant 0 : index
      %38 = vector.load %arg4[%c0_18, %c0_19, %c0_20] : memref<1x8x128xf32, #tpu.memory_space<vmem>>, vector<1x8x128xf32>
      tpu.vector_store %arg4[%c0_18, %c0_19, %c0_20], %37 {strides = array<i32>} : memref<1x8x128xf32, #tpu.memory_space<vmem>>, vector<1x8x128xf32>,
    } else {
    }
    %c0 = arith.constant 0 : index
    %c0_1 = arith.constant 0 : index
    %3 = vector.load %arg2[%c0, %c0_1] : memref<8x20xf32, #tpu.memory_space<vmem>>, vector<8x20xf32>
    %c0_2 = arith.constant 0 : index
    %c0_3 = arith.constant 0 : index
    %4 = vector.load %arg3[%c0_2, %c0_3] : memref<8x1xi32, #tpu.memory_space<vmem>>, vector<8x1xi32>
    %cst = arith.constant dense<0xFF800000> : vector<8xf32>
    %5 = vector.multi_reduction <maximumf>, %3, %cst [1] : vector<8x20xf32> to vector<8xf32>
    %6 = vector.shape_cast %5 : vector<8xf32> to vector<8x1xf32>
    %7 = vector.broadcast %6 : vector<8x1xf32> to vector<8x20xf32>
    %8 = arith.subf %3, %7 : vector<8x20xf32>
    %9 = math.exp %8 : vector<8x20xf32>
    %cst_4 = arith.constant dense<0.000000e+00> : vector<8xf32>
    %10 = vector.multi_reduction <add>, %9, %cst_4 [1] : vector<8x20xf32> to vector<8xf32>
    %11 = vector.shape_cast %10 : vector<8xf32> to vector<8x1xf32>
    %12 = math.log %11 : vector<8x1xf32>
    %13 = arith.addf %6, %12 : vector<8x1xf32>
    %cst_5 = arith.constant dense<0.000000e+00> : vector<8xf32>
    %14 = vector.multi_reduction <add>, %3, %cst_5 [1] : vector<8x20xf32> to vector<8xf32>
    %15 = vector.shape_cast %14 : vector<8xf32> to vector<8x1xf32>
    %16 = tpu.iota {dimensions = array<i32: 1>} : vector<8x20xi32>
    %17 = vector.broadcast %4 : vector<8x1xi32> to vector<8x20xi32>
    %18 = arith.cmpi eq, %16, %17 : vector<8x20xi32>
    %cst_6 = arith.constant 0.000000e+00 : f32
    %19 = vector.broadcast %cst_6 : f32 to vector<8x20xf32>
    %20 = arith.select %18, %3, %19 : vector<8x20xi1>, vector<8x20xf32>
    %cst_7 = arith.constant dense<0.000000e+00> : vector<8xf32>
    %21 = vector.multi_reduction <add>, %20, %cst_7 [1] : vector<8x20xf32> to vector<8xf32>
    %22 = vector.shape_cast %21 : vector<8xf32> to vector<8x1xf32>
    %cst_8 = arith.constant 0.899999976 : f32
    %23 = vector.broadcast %cst_8 : f32 to vector<8x1xf32>
    %24 = arith.mulf %23, %22 : vector<8x1xf32>
    %25 = arith.subf %13, %24 : vector<8x1xf32>
    %cst_9 = arith.constant 5.000000e-03 : f32
    %26 = vector.broadcast %cst_9 : f32 to vector<8x1xf32>
    %27 = arith.mulf %26, %15 : vector<8x1xf32>
    %28 = arith.subf %25, %27 : vector<8x1xf32>
    %c0_10 = arith.constant 0 : index
    %c0_11 = arith.constant 0 : index
    %c0_12 = arith.constant 0 : index
    %29 = vector.load %arg4[%c0_10, %c0_11, %c0_12] : memref<1x8x128xf32, #tpu.memory_space<vmem>>, vector<1x8x128xf32>
    %30 = vector.shape_cast %28 : vector<8x1xf32> to vector<1x8x1xf32>
    %cst_13 = arith.constant dense<0.000000e+00> : vector<1xf32>
    %31 = vector.multi_reduction <add>, %30, %cst_13 [1, 2] : vector<1x8x1xf32> to vector<1xf32>
    %32 = vector.shape_cast %31 : vector<1xf32> to vector<1x1x1xf32>
    %33 = vector.extract %32[0, 0, 0] : f32 from vector<1x1x1xf32>
    %34 = vector.broadcast %33 : f32 to vector<1x8x128xf32>
    %35 = arith.addf %29, %34 : vector<1x8x128xf32>
    %c0_14 = arith.constant 0 : index
    %c0_15 = arith.constant 0 : index
    %c0_16 = arith.constant 0 : index
    %36 = vector.load %arg4[%c0_14, %c0_15, %c0_16] : memref<1x8x128xf32, #tpu.memory_space<vmem>>, vector<1x8x128xf32>
    tpu.vector_store %arg4[%c0_14, %c0_15, %c0_16], %35 {strides = array<i32>} : memref<1x8x128xf32, #tpu.memory_space<vmem>>, vector<1x8x128xf32>,
    return
  }
  func.func @transform_0(%arg0: i32, %arg1: i32) -> (i32, i32) {
    %c1_i32 = arith.constant 1 : i32
    %0 = arith.muli %arg0, %c1_i32 : i32
    %1 = arith.addi %0, %arg1 : i32
    %c0_i32 = arith.constant 0 : i32
    %c0_i32_0 = arith.constant 0 : i32
    return %1, %c0_i32 : i32, i32
  }
  func.func @transform_1(%arg0: i32, %arg1: i32) -> (i32, i32) {
    %c1_i32 = arith.constant 1 : i32
    %0 = arith.muli %arg0, %c1_i32 : i32
    %1 = arith.addi %0, %arg1 : i32
    %c0_i32 = arith.constant 0 : i32
    %c0_i32_0 = arith.constant 0 : i32
    return %1, %c0_i32 : i32, i32
  }
  func.func @transform_2(%arg0: i32, %arg1: i32) -> (i32, i32, i32) {
    %c0_i32 = arith.constant 0 : i32
    %c0_i32_0 = arith.constant 0 : i32
    %c0_i32_1 = arith.constant 0 : i32
    return %arg0, %c0_i32, %c0_i32_0 : i32, i32, i32
  }
}

</mosaic_0001>

<bundles_post_ra>
// kernel: tpu_custom_call.1
= control target key start
LH: loop header
LB: loop body
LE: loop exit
PB: predicated region body
PF: predicated region fallthrough
CT: control target
= control target key end

     0   :  { %vm53_vm0 = vcmask 162816   ;;  %s197_s0 = inlined_call_operand.vmem [shape: f32[8,20], index: 0, kind: input, shape index: {}]   ;;  %s198_s1 = inlined_call_operand.vmem [shape: s32[8,1], index: 1, kind: input, shape index: {}]   ;;  %s199_s2 = inlined_call_operand.hbm [shape: f32[1,8,128], index: 2, kind: output, shape index: {}]  }
   0x1   :  { %v51_v0 = vld [vmem:[%s197_s0] sm:$0xff] }
   0x2   :  { %7 = vsyncpa [#allocation3], 0  ;;  %v54_v1 = vsel %vm53_vm0, %v51_v0, -inf  ;;  %v158_v2 = vmov 0   ;;  %v52_v3 = vld [vmem:[%s198_s1] sm:$0xff]  ;;  %v69_v7 = vlaneseq  ;;  %v66_v14 = vsel %vm53_vm0, %v51_v0, 0.0 }
   0x3   :  { %129 = vset.pattern.permute.xlu0 %v158_v2  ;;  %vm84_vm2 = vcmask 7168   ;;  %s159_s0 = smov [#allocation2]  }
   0x4   :  { %55 = vmax.xlane.f32.xlu0 %v54_v1  ;;  %v70_v8 = vand.u32 127, %v69_v7  ;;  %s104_s1 = sshll.u32 %s159_s0, 4  ;;  %s105_s1 = int_to_ptr.vmem [resolvable:$true] %s104_s1 }
   0x5   :  { %s134_s14 = scalar_lea.vmem %s105_s1, 128  ;;  %p139_p1 = scmp.lt.s32.totalorder %s105_s1, %s105_s1 }
   0x6   :  { %p135_p0 = scmp.ne.s32.totalorder %s105_s1, %s134_s14  ;;  %p140_p2 = scmp.lt.s32.totalorder %s134_s14, %s134_s14 }
   0x8   :  { %p141_p3 = por %p140_p2, %p139_p1 }
   0xa   :  { %p142_p4 = pnand %p141_p3, %p135_p0 }
  0x1a   :  { %72 = vperm.xlu0 %129, %v52_v3  }
  0x91   :  { %v56_v4 = vpop.xlane.xlu0 %55 }
  0x92   :  { %v57_v5 = vsub.f32 %v51_v0, %v56_v4 }
  0x94   :  { %v58_v6 = vmul.f32 1.442695, %v57_v5 }
  0x96   :  { %130 = vpow2.f32 %v58_v6 }
  0x99   :  { %v73_v9 = vpop.permute.xlu0 %72 }
  0x9a   :  { %vm74_vm1 = vcmp.eq.s32.totalorder %v70_v8, %v73_v9 }
  0x9b   :  { %v75_v11 = vsel %vm74_vm1, %v51_v0, 0.0 }
  0x9c   :  { %v76_v13 = vsel %vm53_vm0, %v75_v11, 0.0 }
  0xa0   :  { %v131_v10 = vpop.eup %130 }
  0xa1   :  { %v60_v12 = vsel %vm53_vm0, %v131_v10, 0.0 }
  0xa2   :  { %61 = vadd.xlane.f32.xlu1 %v60_v12 }
  0xa6   :  { %77 = vadd.xlane.f32.xlu1 %v76_v13 }
  0xaa   :  { %67 = vadd.xlane.f32.xlu1 %v66_v14 }
 0x12f   :  { %v62_v15 = vpop.xlane.xlu1 %61 }
 0x130   :  { %132 = vlog2.f32 %v62_v15 }
 0x133   :  { %v78_v16 = vpop.xlane.xlu1 %77 }
 0x134   :  { %v79_v21 = vmul.f32 0.9, %v78_v16 }
 0x137   :  { %v68_v18 = vpop.xlane.xlu1 %67 }
 0x138   :  { %v81_v22 = vmul.f32 0.005, %v68_v18 }
 0x13a   :  { %v133_v17 = vpop.eup %132 }
 0x13b   :  { %v64_v19 = vmul.f32 0.6931472, %v133_v17 }
 0x13d   :  { %v65_v20 = vadd.f32 %v64_v19, %v56_v4 }
 0x13f   :  { %v80_v23 = vsub.f32 %v65_v20, %v79_v21 }
 0x141   :  { %v82_v24 = vsub.f32 %v80_v23, %v81_v22 }
 0x143   :  { %v85_v25 = vsel %vm84_vm2, %v82_v24, 0.0 }
 0x144   :  { %86 = vadd.xlane.f32.xlu1 %v85_v25 }
 0x1d1   :  { %v87_v26 = vpop.xlane.xlu1 %86 }
 0x1d2   :  { %v88_v27 = vrot.slane %v87_v26, 4 }
 0x1d4   :  { %v89_v28 = vadd.f32 %v88_v27, %v87_v26 }
 0x1d6   :  { %v90_v29 = vrot.slane %v89_v28, 2 }
 0x1d8   :  { %v91_v30 = vadd.f32 %v90_v29, %v89_v28 }
 0x1da   :  { %v92_v31 = vrot.slane %v91_v30, 1 }
 0x1dc   :  { %v93_v32 = vadd.f32 %v92_v31, %v91_v30 }
 0x1de   :  { %124 = vpush %v93_v32 }
 0x20f   :  { %s125_s13 = spop %124 }
 0x210   :  { %v95_v33 = vstv %s125_s13 }
 0x211   :  { %97 = vst [vmem:[#allocation2] sm:$0xff] %v95_v33 }
 0x212   :  { %145 = shalt.err (!%p142_p4)
}
 0x213   :  { %s146_s17 = scalar_lea.hbm %s199_s2, 128 }
 0x214   :  { %p147_p5 = scmp.ne.s32.totalorder %s199_s2, %s146_s17  ;;  %p150_p6 = scmp.lt.u32.totalorder %s146_s17, %s199_s2 }
 0x216   :  { %p152_p7 = pnand %p150_p6, %p147_p5 }
 0x218   :  { %155 = shalt.err (!%p152_p7)
}
 0x219   :  { %107 = dma.vmem_to_hbm [thread:$0]  %s105_s1, 128, %s199_s2, [#allocation3]  }
 0x21a   :  { %156 = dma.done.wait [#allocation3], 128  }
 0x21b   :  { %157 = vsyncadd [#allocation3], 4294967168 }
 0x21c   :  { %111 = vsyncpa [#allocation3], 1 }

</bundles_post_ra>
